<compile_context>
chip_gen: v7x
topology: tpu7x:2x2x1
jax: 0.10.0
libtpu: 0.0.40
codegen_flags: <defaults>
</compile_context>

<pallas_src>
import jax
import jax.numpy as jnp
from jax.experimental import pallas as pl
from jax.experimental.pallas import tpu as pltpu

# ---- small, deterministic config consistent with the module ----
VOCAB = 50
EMBED = 32
SEQ_LEN = 8                      # len(input_ids) per example; aspect embedding is ADDED (v2)
KERNEL_SIZES = (2, 3, 4)
NUM_CHANNELS = (8, 8, 8)
NUM_CLASSES = 3
BATCH = 2
N_TAPS = sum(KERNEL_SIZES)                    # 9 real taps (no zero padding)
C_SUM = sum(NUM_CHANNELS)                     # 24
K_FUSED = N_TAPS * EMBED                      # 9 * 32 = 288
VOCAB_PAD = ((VOCAB + 7) // 8) * 8            # 56: multiple-of-8 sublane rows in VMEM
R_ROWS = BATCH * (SEQ_LEN + 1)                # 18 gathered rows: L tokens + 1 aspect per example

_FLOPS = (2 * R_ROWS * VOCAB_PAD * EMBED      # one-hot gather matmul
          + 2 * BATCH * K_FUSED * C_SUM       # fused conv + avgpool matmul
          + 2 * BATCH * C_SUM * NUM_CLASSES)  # decoder (VPU)
_BYTES = 4 * (R_ROWS + VOCAB_PAD * EMBED + K_FUSED * C_SUM + C_SUM
              + NUM_CLASSES * C_SUM + NUM_CLASSES + BATCH * NUM_CLASSES)


def textcnn_kernel(ids_ref, emb_ref, wf_ref, bf_ref, wd_ref, bd_ref, out_ref, xt_ref):
    # ids_ref: (R_ROWS, 1) int32 VMEM -- t-major token ids (t*B + b), then B aspect ids
    # emb_ref: (VOCAB_PAD, EMBED) f32 VMEM
    # wf_ref:  (K_FUSED, C_SUM) f32 fused conv+avgpool weight (block structure, /t_out folded)
    # bf_ref:  (1, C_SUM) conv biases; wd_ref: (NUM_CLASSES, C_SUM); bd_ref: (1, NUM_CLASSES)
    # out_ref: (BATCH, NUM_CLASSES) f32
    # xt_ref:  (BATCH, K_FUSED) f32 scratch -- every lane written before its only read

    # ---- fused embedding gather as ONE one-hot selector matmul (MXU, K = VOCAB_PAD) ----
    iota = jax.lax.broadcasted_iota(jnp.int32, (R_ROWS, VOCAB_PAD), 1)
    sel = (iota == ids_ref[...]).astype(jnp.float32)                       # (R, VOCAB_PAD)
    rows = jnp.dot(sel, emb_ref[...], preferred_element_type=jnp.float32)  # (R, EMBED)

    asp = rows[SEQ_LEN * BATCH:SEQ_LEN * BATCH + BATCH, :]                 # (B, E)
    xs = [rows[t * BATCH:(t + 1) * BATCH, :] for t in range(SEQ_LEN)]      # L x (B, E)

    # ---- prefix sums over token positions (pure VPU adds) ----
    pre = [xs[0]]
    for t in range(1, SEQ_LEN):
        pre.append(pre[-1] + xs[t])

    # ---- per-branch, per-tap windowed sums (conv + avgpool commuted); aspect is broadcast-
    #      added to every position so it contributes t_out * asp to each window sum.
    #      Static 32-lane slice writes into the VMEM scratch (no concatenation).
    j = 0
    for ksz in KERNEL_SIZES:
        t_out = SEQ_LEN - ksz + 1
        asp_scaled = jnp.float32(t_out) * asp
        for k in range(ksz):
            win = pre[k + t_out - 1] - pre[k - 1] if k > 0 else pre[t_out - 1]
            xt_ref[:, j * EMBED:(j + 1) * EMBED] = win + asp_scaled
            j += 1

    # ---- one fused conv+avgpool matmul (bias after pooling), ReLU ----
    pooled = jnp.dot(xt_ref[...], wf_ref[...],
                     preferred_element_type=jnp.float32) + bf_ref[...]      # (B, C_SUM)
    enc = jnp.maximum(pooled, 0.0)

    # TODO(synk): nn.Dropout(0.5) is identity in eval/inference mode; training-mode masking
    #             is not implemented.

    # ---- decoder on VPU/XLU (3 broadcast-muls + lane reductions); no 2nd MXU push ----
    logits = jnp.concatenate(
        [jnp.sum(enc * wd_ref[n:n + 1, :], axis=1, keepdims=True)
         for n in range(NUM_CLASSES)], axis=1)                              # (B, 3)
    out_ref[...] = logits + bd_ref[...]


@jax.jit
def textcnn_forward(input_ids, aspect_token_id, packed):
    # t-major token ids followed by the aspect ids, as a VMEM (R, 1) column.
    ids_all = jnp.concatenate(
        [input_ids.T.reshape(-1), aspect_token_id]).astype(jnp.int32).reshape(R_ROWS, 1)
    return pl.pallas_call(
        textcnn_kernel,
        out_shape=jax.ShapeDtypeStruct((BATCH, NUM_CLASSES), jnp.float32),
        in_specs=[pl.BlockSpec(memory_space=pltpu.MemorySpace.VMEM),   # ids column
                  pl.BlockSpec(memory_space=pltpu.MemorySpace.VMEM),   # embedding (row-padded)
                  pl.BlockSpec(memory_space=pltpu.MemorySpace.VMEM),   # fused conv weight
                  pl.BlockSpec(memory_space=pltpu.MemorySpace.VMEM),   # fused conv bias
                  pl.BlockSpec(memory_space=pltpu.MemorySpace.VMEM),   # decoder weight (3, 24)
                  pl.BlockSpec(memory_space=pltpu.MemorySpace.VMEM)],  # decoder bias
        out_specs=pl.BlockSpec(memory_space=pltpu.MemorySpace.VMEM),
        scratch_shapes=[pltpu.VMEM((BATCH, K_FUSED), jnp.float32)],
        cost_estimate=pl.CostEstimate(flops=_FLOPS, transcendentals=0,
                                      bytes_accessed=_BYTES),
    )(ids_all, packed["emb"], packed["w_fused"], packed["b_fused"],
      packed["dec_w_t"], packed["dec_b"])


def init_params(key):
    n_keys = 1 + 2 * len(KERNEL_SIZES) + 2
    keys = jax.random.split(key, n_keys)
    params = {}
    params["embedding"] = jax.random.normal(keys[0], (VOCAB, EMBED), jnp.float32) * 0.1
    for i, (c, k) in enumerate(zip(NUM_CHANNELS, KERNEL_SIZES)):
        # PyTorch Conv1d weight is (c, EMBED, k); stored here transposed as (k, EMBED, c)
        params[f"conv{i}_w"] = jax.random.normal(keys[1 + 2 * i], (k, EMBED, c), jnp.float32) * 0.05
        params[f"conv{i}_b"] = jax.random.normal(keys[2 + 2 * i], (1, c), jnp.float32) * 0.05
    # PyTorch Linear weight is (3, sum(C)); stored here transposed as (sum(C), 3) for the ref
    params["dec_w"] = jax.random.normal(keys[-2], (C_SUM, NUM_CLASSES), jnp.float32) * 0.05
    params["dec_b"] = jax.random.normal(keys[-1], (1, NUM_CLASSES), jnp.float32) * 0.05
    return params


def pack_params(params):
    """One-time packing: pad embedding rows, build the tightly-packed fused conv+avgpool
    weight (1/t_out folded in), and store the decoder weight in (classes, features) layout
    so each class row is a lane-dense (1, C_SUM) vector for the in-kernel VPU decoder."""
    emb_p = jnp.zeros((VOCAB_PAD, EMBED), jnp.float32).at[:VOCAB].set(params["embedding"])
    wf = jnp.zeros((K_FUSED, C_SUM), jnp.float32)
    bf = jnp.zeros((1, C_SUM), jnp.float32)
    j = 0
    c_off = 0
    for i, (cc, ksz) in enumerate(zip(NUM_CHANNELS, KERNEL_SIZES)):
        t_out = SEQ_LEN - ksz + 1
        for k in range(ksz):
            wf = wf.at[j * EMBED:(j + 1) * EMBED, c_off:c_off + cc].set(
                params[f"conv{i}_w"][k] / t_out)            # pool scale folded in
            j += 1
        bf = bf.at[:, c_off:c_off + cc].set(params[f"conv{i}_b"])
        c_off += cc
    return {"emb": emb_p, "w_fused": wf, "b_fused": bf,
            "dec_w_t": params["dec_w"].T, "dec_b": params["dec_b"]}


def reference_forward(input_ids, aspect_token_id, params):
    # pure-JAX reference mirroring the PyTorch TextCNNv2 forward (eval mode)
    emb = params["embedding"]
    input_x = emb[input_ids]                      # (B, L, E)
    aspect_x = emb[aspect_token_id]               # (B, E)
    x = input_x + aspect_x[:, None, :]            # torch.add(input_x, aspect_x.unsqueeze(1))
    encs = []
    for i, (c, ksz) in enumerate(zip(NUM_CHANNELS, KERNEL_SIZES)):
        w = params[f"conv{i}_w"]                  # (ksz, E, c)
        b = params[f"conv{i}_b"]                  # (1, c)
        t_out = SEQ_LEN - ksz + 1
        y = jnp.zeros((BATCH, t_out, c), jnp.float32)
        for k in range(ksz):
            y = y + jnp.einsum("bte,ec->btc", x[:, k:k + t_out, :], w[k])
        y = y + b[None]
        encs.append(jnp.maximum(jnp.mean(y, axis=1), 0.0))   # relu(pool(conv(x)))
    enc = jnp.concatenate(encs, axis=1)
    return enc @ params["dec_w"] + params["dec_b"]


if __name__ == "__main__":
    key = jax.random.PRNGKey(0)
    pkey, ikey, akey = jax.random.split(key, 3)
    params = init_params(pkey)
    packed = pack_params(params)
    input_ids = jax.random.randint(ikey, (BATCH, SEQ_LEN), 0, VOCAB, dtype=jnp.int32)
    aspect_token_id = jax.random.randint(akey, (BATCH,), 0, VOCAB, dtype=jnp.int32)

    out = textcnn_forward(input_ids, aspect_token_id, packed)
    out = jax.block_until_ready(out)

    ref = reference_forward(input_ids, aspect_token_id, params)
    assert out.shape == (BATCH, NUM_CLASSES)
    assert jnp.allclose(out, ref, atol=1e-4, rtol=1e-4), (out, ref)
    print("KERNEL_OK")
</pallas_src>

<mosaic_0001>
module attributes {stable_mosaic.version = 11 : i64} {
  func.func @textcnn_kernel(%arg0: memref<18x1xi32, #tpu.memory_space<vmem>>, %arg1: memref<56x32xf32, #tpu.memory_space<vmem>>, %arg2: memref<288x24xf32, #tpu.memory_space<vmem>>, %arg3: memref<1x24xf32, #tpu.memory_space<vmem>>, %arg4: memref<3x24xf32, #tpu.memory_space<vmem>>, %arg5: memref<1x3xf32, #tpu.memory_space<vmem>>, %arg6: memref<2x3xf32, #tpu.memory_space<vmem>>, %arg7: memref<2x288xf32, #tpu.memory_space<vmem>>) attributes {dimension_semantics = [], scalar_prefetch = 0 : i64, scratch_operands = 1 : i64, tpu.core_type = #tpu.core_type<tc>} {
    %0 = tpu.iota {dimensions = array<i32: 1>} : vector<18x56xi32>
    %c0 = arith.constant 0 : index
    %c0_0 = arith.constant 0 : index
    %1 = vector.load %arg0[%c0, %c0_0] : memref<18x1xi32, #tpu.memory_space<vmem>>, vector<18x1xi32>
    %2 = vector.broadcast %1 : vector<18x1xi32> to vector<18x56xi32>
    %3 = arith.cmpi eq, %0, %2 : vector<18x56xi32>
    %4 = arith.extui %3 : vector<18x56xi1> to vector<18x56xi32>
    %5 = arith.sitofp %4 : vector<18x56xi32> to vector<18x56xf32>
    %c0_1 = arith.constant 0 : index
    %c0_2 = arith.constant 0 : index
    %6 = vector.load %arg1[%c0_1, %c0_2] : memref<56x32xf32, #tpu.memory_space<vmem>>, vector<56x32xf32>
    %cst = arith.constant dense<0.000000e+00> : vector<18x32xf32>
    %7 = tpu.matmul %5, %6, %cst {dimension_numbers = #tpu.dot_dimension_numbers<[1], [0], [0], [1], [0, 0, 1, 1], [], []>} : vector<18x56xf32>, vector<56x32xf32>, vector<18x32xf32> -> vector<18x32xf32>
    %8 = vector.extract_strided_slice %7 {offsets = [16, 0], sizes = [2, 32], strides = [1, 1]} : vector<18x32xf32> to vector<2x32xf32>
    %9 = vector.extract_strided_slice %7 {offsets = [0, 0], sizes = [2, 32], strides = [1, 1]} : vector<18x32xf32> to vector<2x32xf32>
    %10 = vector.extract_strided_slice %7 {offsets = [2, 0], sizes = [2, 32], strides = [1, 1]} : vector<18x32xf32> to vector<2x32xf32>
    %11 = vector.extract_strided_slice %7 {offsets = [4, 0], sizes = [2, 32], strides = [1, 1]} : vector<18x32xf32> to vector<2x32xf32>
    %12 = vector.extract_strided_slice %7 {offsets = [6, 0], sizes = [2, 32], strides = [1, 1]} : vector<18x32xf32> to vector<2x32xf32>
    %13 = vector.extract_strided_slice %7 {offsets = [8, 0], sizes = [2, 32], strides = [1, 1]} : vector<18x32xf32> to vector<2x32xf32>
    %14 = vector.extract_strided_slice %7 {offsets = [10, 0], sizes = [2, 32], strides = [1, 1]} : vector<18x32xf32> to vector<2x32xf32>
    %15 = vector.extract_strided_slice %7 {offsets = [12, 0], sizes = [2, 32], strides = [1, 1]} : vector<18x32xf32> to vector<2x32xf32>
    %16 = vector.extract_strided_slice %7 {offsets = [14, 0], sizes = [2, 32], strides = [1, 1]} : vector<18x32xf32> to vector<2x32xf32>
    %17 = arith.addf %9, %10 : vector<2x32xf32>
    %18 = arith.addf %17, %11 : vector<2x32xf32>
    %19 = arith.addf %18, %12 : vector<2x32xf32>
    %20 = arith.addf %19, %13 : vector<2x32xf32>
    %21 = arith.addf %20, %14 : vector<2x32xf32>
    %22 = arith.addf %21, %15 : vector<2x32xf32>
    %23 = arith.addf %22, %16 : vector<2x32xf32>
    %cst_3 = arith.constant 7.000000e+00 : f32
    %24 = vector.broadcast %cst_3 : f32 to vector<2x32xf32>
    %25 = arith.mulf %24, %8 : vector<2x32xf32>
    %26 = arith.addf %22, %25 : vector<2x32xf32>
    %c0_4 = arith.constant 0 : index
    %c0_5 = arith.constant 0 : index
    %27 = vector.load %arg7[%c0_4, %c0_5] : memref<2x288xf32, #tpu.memory_space<vmem>>, vector<2x32xf32>
    tpu.vector_store %arg7[%c0_4, %c0_5], %26 {strides = array<i32>} : memref<2x288xf32, #tpu.memory_space<vmem>>, vector<2x32xf32>,
    %28 = arith.subf %23, %9 : vector<2x32xf32>
    %29 = arith.addf %28, %25 : vector<2x32xf32>
    %c0_6 = arith.constant 0 : index
    %c32 = arith.constant 32 : index
    %30 = vector.load %arg7[%c0_6, %c32] : memref<2x288xf32, #tpu.memory_space<vmem>>, vector<2x32xf32>
    tpu.vector_store %arg7[%c0_6, %c32], %29 {strides = array<i32>} : memref<2x288xf32, #tpu.memory_space<vmem>>, vector<2x32xf32>,
    %cst_7 = arith.constant 6.000000e+00 : f32
    %31 = vector.broadcast %cst_7 : f32 to vector<2x32xf32>
    %32 = arith.mulf %31, %8 : vector<2x32xf32>
    %33 = arith.addf %21, %32 : vector<2x32xf32>
    %c0_8 = arith.constant 0 : index
    %c64 = arith.constant 64 : index
    %34 = vector.load %arg7[%c0_8, %c64] : memref<2x288xf32, #tpu.memory_space<vmem>>, vector<2x32xf32>
    tpu.vector_store %arg7[%c0_8, %c64], %33 {strides = array<i32>} : memref<2x288xf32, #tpu.memory_space<vmem>>, vector<2x32xf32>,
    %35 = arith.subf %22, %9 : vector<2x32xf32>
    %36 = arith.addf %35, %32 : vector<2x32xf32>
    %c0_9 = arith.constant 0 : index
    %c96 = arith.constant 96 : index
    %37 = vector.load %arg7[%c0_9, %c96] : memref<2x288xf32, #tpu.memory_space<vmem>>, vector<2x32xf32>
    tpu.vector_store %arg7[%c0_9, %c96], %36 {strides = array<i32>} : memref<2x288xf32, #tpu.memory_space<vmem>>, vector<2x32xf32>,
    %38 = arith.subf %23, %17 : vector<2x32xf32>
    %39 = arith.addf %38, %32 : vector<2x32xf32>
    %c0_10 = arith.constant 0 : index
    %c128 = arith.constant 128 : index
    %40 = vector.load %arg7[%c0_10, %c128] : memref<2x288xf32, #tpu.memory_space<vmem>>, vector<2x32xf32>
    tpu.vector_store %arg7[%c0_10, %c128], %39 {strides = array<i32>} : memref<2x288xf32, #tpu.memory_space<vmem>>, vector<2x32xf32>,
    %cst_11 = arith.constant 5.000000e+00 : f32
    %41 = vector.broadcast %cst_11 : f32 to vector<2x32xf32>
    %42 = arith.mulf %41, %8 : vector<2x32xf32>
    %43 = arith.addf %20, %42 : vector<2x32xf32>
    %c0_12 = arith.constant 0 : index
    %c160 = arith.constant 160 : index
    %44 = vector.load %arg7[%c0_12, %c160] : memref<2x288xf32, #tpu.memory_space<vmem>>, vector<2x32xf32>
    tpu.vector_store %arg7[%c0_12, %c160], %43 {strides = array<i32>} : memref<2x288xf32, #tpu.memory_space<vmem>>, vector<2x32xf32>,
    %45 = arith.subf %21, %9 : vector<2x32xf32>
    %46 = arith.addf %45, %42 : vector<2x32xf32>
    %c0_13 = arith.constant 0 : index
    %c192 = arith.constant 192 : index
    %47 = vector.load %arg7[%c0_13, %c192] : memref<2x288xf32, #tpu.memory_space<vmem>>, vector<2x32xf32>
    tpu.vector_store %arg7[%c0_13, %c192], %46 {strides = array<i32>} : memref<2x288xf32, #tpu.memory_space<vmem>>, vector<2x32xf32>,
    %48 = arith.subf %22, %17 : vector<2x32xf32>
    %49 = arith.addf %48, %42 : vector<2x32xf32>
    %c0_14 = arith.constant 0 : index
    %c224 = arith.constant 224 : index
    %50 = vector.load %arg7[%c0_14, %c224] : memref<2x288xf32, #tpu.memory_space<vmem>>, vector<2x32xf32>
    tpu.vector_store %arg7[%c0_14, %c224], %49 {strides = array<i32>} : memref<2x288xf32, #tpu.memory_space<vmem>>, vector<2x32xf32>,
    %51 = arith.subf %23, %18 : vector<2x32xf32>
    %52 = arith.addf %51, %42 : vector<2x32xf32>
    %c0_15 = arith.constant 0 : index
    %c256 = arith.constant 256 : index
    %53 = vector.load %arg7[%c0_15, %c256] : memref<2x288xf32, #tpu.memory_space<vmem>>, vector<2x32xf32>
    tpu.vector_store %arg7[%c0_15, %c256], %52 {strides = array<i32>} : memref<2x288xf32, #tpu.memory_space<vmem>>, vector<2x32xf32>,
    %c0_16 = arith.constant 0 : index
    %c0_17 = arith.constant 0 : index
    %54 = vector.load %arg7[%c0_16, %c0_17] : memref<2x288xf32, #tpu.memory_space<vmem>>, vector<2x288xf32>
    %c0_18 = arith.constant 0 : index
    %c0_19 = arith.constant 0 : index
    %55 = vector.load %arg2[%c0_18, %c0_19] : memref<288x24xf32, #tpu.memory_space<vmem>>, vector<288x24xf32>
    %cst_20 = arith.constant dense<0.000000e+00> : vector<2x24xf32>
    %56 = tpu.matmul %54, %55, %cst_20 {dimension_numbers = #tpu.dot_dimension_numbers<[1], [0], [0], [1], [0, 0, 1, 1], [], []>} : vector<2x288xf32>, vector<288x24xf32>, vector<2x24xf32> -> vector<2x24xf32>
    %c0_21 = arith.constant 0 : index
    %c0_22 = arith.constant 0 : index
    %57 = vector.load %arg3[%c0_21, %c0_22] : memref<1x24xf32, #tpu.memory_space<vmem>>, vector<1x24xf32>
    %58 = vector.broadcast %57 : vector<1x24xf32> to vector<2x24xf32>
    %59 = arith.addf %56, %58 : vector<2x24xf32>
    %cst_23 = arith.constant 0.000000e+00 : f32
    %60 = vector.broadcast %cst_23 : f32 to vector<2x24xf32>
    %61 = arith.maximumf %59, %60 : vector<2x24xf32>
    %c0_24 = arith.constant 0 : index
    %c0_25 = arith.constant 0 : index
    %62 = vector.load %arg4[%c0_24, %c0_25] : memref<3x24xf32, #tpu.memory_space<vmem>>, vector<1x24xf32>
    %63 = vector.broadcast %62 : vector<1x24xf32> to vector<2x24xf32>
    %64 = arith.mulf %61, %63 : vector<2x24xf32>
    %cst_26 = arith.constant dense<0.000000e+00> : vector<2xf32>
    %65 = vector.multi_reduction <add>, %64, %cst_26 [1] : vector<2x24xf32> to vector<2xf32>
    %66 = vector.shape_cast %65 : vector<2xf32> to vector<2x1xf32>
    %c1 = arith.constant 1 : index
    %c0_27 = arith.constant 0 : index
    %67 = vector.load %arg4[%c1, %c0_27] : memref<3x24xf32, #tpu.memory_space<vmem>>, vector<1x24xf32>
    %68 = vector.broadcast %67 : vector<1x24xf32> to vector<2x24xf32>
    %69 = arith.mulf %61, %68 : vector<2x24xf32>
    %cst_28 = arith.constant dense<0.000000e+00> : vector<2xf32>
    %70 = vector.multi_reduction <add>, %69, %cst_28 [1] : vector<2x24xf32> to vector<2xf32>
    %71 = vector.shape_cast %70 : vector<2xf32> to vector<2x1xf32>
    %c2 = arith.constant 2 : index
    %c0_29 = arith.constant 0 : index
    %72 = vector.load %arg4[%c2, %c0_29] : memref<3x24xf32, #tpu.memory_space<vmem>>, vector<1x24xf32>
    %73 = vector.broadcast %72 : vector<1x24xf32> to vector<2x24xf32>
    %74 = arith.mulf %61, %73 : vector<2x24xf32>
    %cst_30 = arith.constant dense<0.000000e+00> : vector<2xf32>
    %75 = vector.multi_reduction <add>, %74, %cst_30 [1] : vector<2x24xf32> to vector<2xf32>
    %76 = vector.shape_cast %75 : vector<2xf32> to vector<2x1xf32>
    %77 = tpu.concatenate %66, %71, %76 in 1 : vector<2x1xf32>, vector<2x1xf32>, vector<2x1xf32> -> vector<2x3xf32>
    %c0_31 = arith.constant 0 : index
    %c0_32 = arith.constant 0 : index
    %78 = vector.load %arg5[%c0_31, %c0_32] : memref<1x3xf32, #tpu.memory_space<vmem>>, vector<1x3xf32>
    %79 = vector.broadcast %78 : vector<1x3xf32> to vector<2x3xf32>
    %80 = arith.addf %77, %79 : vector<2x3xf32>
    %c0_33 = arith.constant 0 : index
    %c0_34 = arith.constant 0 : index
    %81 = vector.load %arg6[%c0_33, %c0_34] : memref<2x3xf32, #tpu.memory_space<vmem>>, vector<2x3xf32>
    tpu.vector_store %arg6[%c0_33, %c0_34], %80 {strides = array<i32>} : memref<2x3xf32, #tpu.memory_space<vmem>>, vector<2x3xf32>,
    return
  }
}

</mosaic_0001>

<bundles_post_ra>
// kernel: textcnn_forward.1
= control target key start
LH: loop header
LB: loop body
LE: loop exit
PB: predicated region body
PF: predicated region fallthrough
CT: control target
= control target key end

     0   :  { %v704_v2 = vmov 0   ;;  %v705_v9 = vmov 0.0|0.0   ;;  %vm706_vm0 = vmmov 0   ;;  %v707_v10 = vmov 0.0   ;;  %s960_s0 = inlined_call_operand.vmem [shape: s32[18,1], index: 0, kind: input, shape index: {}]   ;;  %s961_s1 = inlined_call_operand.vmem [shape: f32[56,32], index: 1, kind: input, shape index: {}]   ;;  %s962_s2 = inlined_call_operand.vmem [shape: f32[288,24], index: 2, kind: input, shape index: {}]   ;;  %s963_s3 = inlined_call_operand.vmem [shape: f32[1,24], index: 3, kind: input, shape index: {}]   ;;  %s964_s4 = inlined_call_operand.vmem [shape: f32[3,24], index: 4, kind: input, shape index: {}]   ;;  %s965_s5 = inlined_call_operand.vmem [shape: f32[1,3], index: 5, kind: input, shape index: {}]   ;;  %s966_s6 = inlined_call_operand.hbm [shape: f32[2,3], index: 6, kind: output, shape index: {}]  }
   0x1   :  { %v26_v0 = vld [vmem:[%s960_s0] sm:$0xff]  ;;  %v28_v1 = vld [vmem:[%s960_s0 + $0x10] sm:$0x3]  ;;  %677 = vset.pattern.permute.xlu0 %v704_v2  ;;  %678 = vset.pattern.permute.xlu1 %v704_v2  ;;  %v48_v4 = vld [vmem:[%s961_s1 + $0x8] sm:$0xff] }
   0x2   :  { %v47_v3 = vld [vmem:[%s961_s1] sm:$0xff]  ;;  %v49_v5 = vld [vmem:[%s961_s1 + $0x10] sm:$0xff]  ;;  %30 = vperm.xlu0 %677, %v26_v0   ;;  %36 = vperm.xlu1 %678, %v28_v1   ;;  %v50_v7 = vld [vmem:[%s961_s1 + $0x18] sm:$0xff] }
   0x3   :  { %v622_v6 = vpack.c.bf16 %v48_v4, %v47_v3  ;;  %v27_v8 = vld [vmem:[%s960_s0 + $0x8] sm:$0xff]  ;;  %621 = vmatprep.subr.bf16.mxu0 %v705_v9  ;;  %601 = vmatprep.mubr.msk.f32.mxu0 %vm706_vm0, %v707_v10 }
   0x4   :  { %11 = vsyncpa [#allocation4], 0  ;;  %v625_v11 = vpack.c.bf16 %v50_v7, %v49_v5  ;;  %v51_v12 = vld [vmem:[%s961_s1 + $0x20] sm:$0xff]  ;;  %v52_v13 = vld [vmem:[%s961_s1 + $0x28] sm:$0xff]  ;;  %v24_v16 = vlaneseq  ;;  %vm54_vm1 = vcmask 457728   ;;  %vm167_vm5 = vcmask 254976  }
   0x5   :  { %623 = vmatpush3.bf16.msra.mxu0 %v622_v6  ;;  %v628_v14 = vpack.c.bf16 %v52_v13, %v51_v12  ;;  %v53_v15 = vld [vmem:[%s961_s1 + $0x30] sm:$0xff]  ;;  %v279_v24 = vld [vmem:[%s962_s2 + $0x80] sm:$0xff]  ;;  %v280_v25 = vld [vmem:[%s962_s2 + $0x88] sm:$0xff]  ;;  %v708_v36 = vmov 1983009808   ;;  %s709_s0 = smov 32  }
   0x6   :  { %624 = vmatprep.subr.bf16.mxu0 %v705_v9  ;;  %33 = vperm.xlu0 %677, %v27_v8   ;;  %v25_v17 = vand.u32 127, %v24_v16  ;;  %v263_v26 = vld [vmem:[%s962_s2] sm:$0xff]  ;;  %v630_v27 = vpack.c.bf16 %v280_v25, %v279_v24  ;;  %v264_v28 = vld [vmem:[%s962_s2 + $0x8] sm:$0xff]  ;;  %v281_v29 = vld [vmem:[%s962_s2 + $0x90] sm:$0xff]  ;;  %v173_v37 = vunpack.c.l.s4 %v708_v36  ;;  %v176_v50 = vshrl.u32 %v24_v16, 7  ;;  %s710_s26 = smov 64  }
   0x7   :  { %v282_v30 = vld [vmem:[%s962_s2 + $0x98] sm:$0xff]  ;;  %v632_v31 = vpack.c.bf16 %v264_v28, %v263_v26  ;;  %v265_v33 = vld [vmem:[%s962_s2 + $0x10] sm:$0xff]  ;;  %v283_v41 = vld [vmem:[%s962_s2 + $0xa0] sm:$0xff]  ;;  %s711_s13 = smov 96   ;;  %vm182_vm6 = vcmask 517376   ;;  %vm197_vm7 = vcmask 779776  }
   0x8   :  { %v634_v32 = vpack.c.bf16 %v282_v30, %v281_v29  ;;  %v266_v34 = vld [vmem:[%s962_s2 + $0x18] sm:$0xff]  ;;  %631 = vmatprep.subr.bf16.mxu1 %v630_v27  ;;  %v284_v42 = vld [vmem:[%s962_s2 + $0xa8] sm:$0xff]  ;;  %v267_v44 = vld [vmem:[%s962_s2 + $0x20] sm:$0xff]  ;;  %v174_v49 = vunpack.c.0.s8 %v173_v37  ;;  %vm212_vm8 = vcmask 1042176   ;;  %vm325_vm9 = vcmask 261120   ;;  %s712_s20 = smov [#allocation3]  }
   0x9   :  { %626 = vmatpush3.bf16.msra.mxu0 %v625_v11  ;;  %633 = vmatpush3.bf16.msra.mxu1 %v632_v31  ;;  %v636_v35 = vpack.c.bf16 %v266_v34, %v265_v33  ;;  %v638_v43 = vpack.c.bf16 %v284_v42, %v283_v41  ;;  %v268_v45 = vld [vmem:[%s962_s2 + $0x28] sm:$0xff]  ;;  %v285_v55 = vld [vmem:[%s962_s2 + $0xb0] sm:$0xff]  ;;  %v286_v56 = vld [vmem:[%s962_s2 + $0xb8] sm:$0xff]  ;;  %vm475_vm10 = vcmask 189440   ;;  %vm497_vm11 = vcmask 7168   ;;  %s517_s21 = sshll.u32 %s712_s20, 4  ;;  %s518_s21 = int_to_ptr.vmem [resolvable:$true] %s517_s21 }
   0xa   :  { %627 = vmatprep.subr.bf16.mxu0 %v705_v9  ;;  %635 = vmatprep.subr.bf16.mxu1 %v634_v32  ;;  %v640_v48 = vpack.c.bf16 %v268_v45, %v267_v44  ;;  %v642_v57 = vpack.c.bf16 %v286_v56, %v285_v55  ;;  %v269_v58 = vld [vmem:[%s962_s2 + $0x30] sm:$0xff]  ;;  %v270_v59 = vld [vmem:[%s962_s2 + $0x38] sm:$0xff]  ;;  %v846_v62 = vsub.s32 %v174_v49, %v176_v50  ;;  %v287_v5 = vld [vmem:[%s962_s2 + $0xc0] sm:$0xff]  ;;  %vm499_vm12 = vcmask 15360   ;;  %p685_p1 = scmp.lt.s32.totalorder %s518_s21, %s518_s21 }
   0xb   :  { %v644_v61 = vpack.c.bf16 %v270_v59, %v269_v58  ;;  %v288_v6 = vld [vmem:[%s962_s2 + $0xc8] sm:$0xff]  ;;  %v273_v24 = vld [vmem:[%s962_s2 + $0x50] sm:$0xff]  ;;  %v274_v25 = vld [vmem:[%s962_s2 + $0x58] sm:$0xff]  ;;  %vm509_vm13 = vcmask 17408  }
   0xc   :  { %v646_v8 = vpack.c.bf16 %v288_v6, %v287_v5  ;;  %v272_v11 = vld [vmem:[%s962_s2 + $0x48] sm:$0xff]  ;;  %v291_v26 = vld [vmem:[%s962_s2 + $0xe0] sm:$0xff]  ;;  %v652_v36 = vpack.c.bf16 %v274_v25, %v273_v24  ;;  %v293_v41 = vld [vmem:[%s962_s2 + $0xf0] sm:$0xff] }
   0xd   :  { %629 = vmatpush3.bf16.msra.mxu0 %v628_v14  ;;  %637 = vmatpush3.bf16.msra.mxu1 %v636_v35  ;;  %v292_v31 = vld [vmem:[%s962_s2 + $0xe8] sm:$0xff]  ;;  %v295_v32 = vld [vmem:[%s962_s2 + $0x100] sm:$0xff]  ;;  %v277_v55 = vld [vmem:[%s962_s2 + $0x70] sm:$0xff] }
   0xe   :  { %599 = vmatprep.subr.mxu0 %v707_v10  ;;  %639 = vmatprep.subr.bf16.mxu1 %v638_v43  ;;  %v296_v33 = vld [vmem:[%s962_s2 + $0x108] sm:$0xff]  ;;  %v654_v37 = vpack.c.bf16 %v292_v31, %v291_v26  ;;  %v278_v56 = vld [vmem:[%s962_s2 + $0x78] sm:$0xff] }
  0x11   :  { %600 = vmatpush3.msra.mxu0 %v53_v15  ;;  %641 = vmatpush3.bf16.msra.mxu1 %v640_v48  ;;  %v297_v48 = vld [vmem:[%s962_s2 + $0x110] sm:$0xff] }
  0x12   :  { %662 = vmatprep.subr.bf16.mxu0 %v705_v9  ;;  %643 = vmatprep.subr.bf16.mxu1 %v642_v57 }
  0x15   :  { %645 = vmatpush3.bf16.msra.mxu1 %v644_v61  ;;  %v660_v61 = vpack.c.bf16 %v278_v56, %v277_v55 }
  0x16   :  { %647 = vmatprep.subr.bf16.mxu1 %v646_v8 }
  0x81   :  { %v31_v18 = vpop.permute.xlu0 %30  ;;  %v37_v20 = vpop.permute.xlu1 %36 }
  0x82   :  { %vm38_vm2 = vcmp.eq.s32.totalorder %v25_v17, %v31_v18  ;;  %vm40_vm4 = vcmp.eq.s32.totalorder %v25_v17, %v37_v20 }
  0x83   :  { %v525_v19 = vsel %vm38_vm2, 1.0, %v707_v10  ;;  %v527_v23 = vsel %vm40_vm4, 1.0, %v707_v10 }
  0x84   :  { %602 = vmatmul.mubr.msk.f32.vlgmr.msra.gmra.mrb[0].mxu0 %vm54_vm1, %v525_v19 }
  0x85   :  { %v34_v21 = vpop.permute.xlu0 %33  ;;  %604 = vmatprep.mubr.msk.f32.mxu0 %vm706_vm0, %v707_v10 }
  0x86   :  { %vm39_vm3 = vcmp.eq.s32.totalorder %v25_v17, %v34_v21  ;;  %v289_v21 = vld [vmem:[%s962_s2 + $0xd0] sm:$0xff] }
  0x87   :  { %v526_v22 = vsel %vm39_vm3, 1.0, %v707_v10 }
  0x88   :  { %605 = vmatmul.mubr.msk.f32.gmra.mrb[2].mxu0 %vm54_vm1, %v526_v22  ;;  %v290_v22 = vld [vmem:[%s962_s2 + $0xd8] sm:$0xff] }
  0x89   :  { %607 = vmatprep.mubr.msk.f32.mxu0 %vm706_vm0, %v707_v10 }
  0x8c   :  { %608 = vmatmul.mubr.msk.f32.gmra.mrb[4].mxu0 %vm54_vm1, %v527_v23  ;;  %v650_v23 = vpack.c.bf16 %v290_v22, %v289_v21  ;;  %v535_v21 = vld [vmem:[%s964_s4 + $0x2] ss:$0 sm:$0xff] }
  0x8d   :  { %618 = vmatprep.mubr.msk.f32.mxu0 %vm706_vm0, %v707_v10  ;;  %v271_v10 = vld [vmem:[%s962_s2 + $0x40] sm:$0xff] }
  0x8e   :  { %v648_v15 = vpack.c.bf16 %v272_v11, %v271_v10 }
  0x90   :  { %649 = vmatpush3.bf16.msra.mxu1 %v648_v15 }
  0x91   :  { %651 = vmatprep.subr.bf16.mxu1 %v650_v23 }
  0x94   :  { %653 = vmatpush3.bf16.msra.mxu1 %v652_v36 }
  0x95   :  { %655 = vmatprep.subr.bf16.mxu1 %v654_v37 }
 0x157   :  { %v810_v38 = vpop.f32.mrb[0].mxu0 }
 0x158   :  { %v145_v39 = vrot.slane %v810_v38, 2  ;;  %v603_v40 = vpop.f32.mrb[1].mxu0  ;;  %v148_v47 = vrot.slane %v810_v38, 4  ;;  %v151_v53 = vrot.slane %v810_v38, 6 }
 0x159   :  { %v276_v40 = vld [vmem:[%s962_s2 + $0x68] sm:$0xff] }
 0x15a   :  { %v826_v46 = vadd.f32 %v145_v39, %v810_v38  ;;  %v275_v39 = vld [vmem:[%s962_s2 + $0x60] sm:$0xff] }
 0x15b   :  { %v135_v51 = vpop.f32.mrb[2].mxu0 }
 0x15c   :  { %v830_v52 = vadd.f32 %v148_v47, %v826_v46  ;;  %v606_v54 = vpop.f32.mrb[3].mxu0  ;;  %v156_v1 = vrot.slane %v135_v51, 2  ;;  %v159_v7 = vrot.slane %v135_v51, 4  ;;  %v162_v16 = vrot.slane %v135_v51, 6  ;;  %v294_v47 = vld [vmem:[%s962_s2 + $0xf8] sm:$0xff] }
 0x15d   :  { %v658_v57 = vpack.c.bf16 %v294_v47, %v293_v41 }
 0x15e   :  { %v153_v60 = vadd.f32 %v151_v53, %v830_v52 }
 0x15f   :  { %v140_v63 = vpop.f32.mrb[4].mxu0 }
 0x160   :  { %v154_v0 = vadd.f32 %v153_v60, %v135_v51  ;;  %v848_v2 = vmul.f32 6.0, %v140_v63  ;;  %v217_v3 = vmul.f32 5.0, %v140_v63  ;;  %v609_v4 = vpop.f32.mrb[5].mxu0  ;;  %v165_v13 = vmul.f32 7.0, %v140_v63 }
 0x161   :  { %v663_v51 = vpack.c.bf16 %v296_v33, %v295_v32 }
 0x162   :  { %v158_v12 = vadd.f32 %v156_v1, %v154_v0  ;;  %v218_v14 = vadd.f32 %v217_v3, %v154_v0 }
 0x163   :  { %664 = vmatpush3.bf16.msra.mxu0 %v663_v51 }
 0x164   :  { %v161_v17 = vadd.f32 %v159_v7, %v158_v12  ;;  %v226_v18 = vrot.slane %v218_v14, %v846_v62  ;;  %v185_v19 = vadd.f32 %v848_v2, %v158_v12  ;;  %v231_v20 = vsub.f32 %v158_v12, %v810_v38  ;;  %665 = vmatprep.subr.bf16.mxu0 %v705_v9  ;;  %v531_v14 = vld [vmem:[%s963_s3] ss:$0 sm:$0xff] }
 0x166   :  { %v164_v27 = vadd.f32 %v162_v16, %v161_v17  ;;  %v166_v28 = vadd.f32 %v165_v13, %v161_v17  ;;  %227 = vrot.lane.b32.xlu0 %v226_v18, %s709_s0  ;;  %v193_v29 = vrot.slane %v185_v19, %v846_v62  ;;  %v232_v30 = vadd.f32 %v231_v20, %v217_v3  ;;  %v534_v19 = vld [vmem:[%s964_s4 + $0x1] ss:$0 sm:$0xff] }
 0x167   :  { %v245_v34 = vsub.f32 %v161_v17, %v826_v46  ;;  %v199_v35 = vsub.f32 %v161_v17, %v810_v38 }
 0x168   :  { %v259_v42 = vsub.f32 %v164_v27, %v830_v52  ;;  %v169_v43 = vsub.f32 %v164_v27, %v810_v38  ;;  %194 = vrot.lane.b32.xlu1 %v193_v29, %s710_s26  ;;  %v240_v44 = vrot.slane %v232_v30, %v846_v62  ;;  %v214_v45 = vsub.f32 %v164_v27, %v826_v46  ;;  %v298_v38 = vld [vmem:[%s962_s2 + $0x118] sm:$0xff]  ;;  %v536_v30 = vld [vmem:[%s965_s5] ss:$0 sm:$0xff] }
 0x169   :  { %168 = vst.msk [vmem:[#allocation2] sm:$0x3] %vm167_vm5, %v166_v28  ;;  %v246_v49 = vadd.f32 %v245_v34, %v217_v3  ;;  %v200_v50 = vadd.f32 %v199_v35, %v848_v2  ;;  %v656_v46 = vpack.c.bf16 %v276_v40, %v275_v39  ;;  %v666_v58 = vpack.c.bf16 %v298_v38, %v297_v48 }
 0x16a   :  { %v170_v52 = vadd.f32 %v169_v43, %v165_v13  ;;  %241 = vrot.lane.b32.xlu0 %v240_v44, %s710_s26  ;;  %v260_v53 = vadd.f32 %v259_v42, %v217_v3  ;;  %v215_v54 = vadd.f32 %v214_v45, %v848_v2 }
 0x16b   :  { %v254_v59 = vrot.slane %v246_v49, %v846_v62  ;;  %657 = vmatpush3.bf16.msra.mxu1 %v656_v46  ;;  %667 = vmatpush3.bf16.msra.mxu0 %v666_v58  ;;  %v208_v63 = vrot.slane %v200_v50, %v846_v62 }
 0x16c   :  { %v178_v60 = vrot.slane %v170_v52, %v846_v62  ;;  %261 = vst.msk [vmem:[#allocation2 + $0x4] sm:$0x3] %vm167_vm5, %v260_v53  ;;  %216 = vst.msk [vmem:[#allocation2 + $0x2] sm:$0x3] %vm167_vm5, %v215_v54  ;;  %659 = vmatprep.subr.bf16.mxu1 %v658_v57 }
 0x16e   :  { %255 = vrot.lane.b32.xlu0 %v254_v59, %s711_s13  ;;  %179 = vrot.lane.b32.xlu1 %v178_v60, %s709_s0 }
 0x16f   :  { %661 = vmatpush3.bf16.msra.mxu1 %v660_v61 }
 0x172   :  { %209 = vrot.lane.b32.xlu1 %v208_v63, %s711_s13 }
 0x1d8   :  { %v228_v0 = vpop.permute.xlu0 %227 }
 0x1d9   :  { %230 = vst.msk [vmem:[#allocation2 + $0x2] sm:$0x3] %vm182_vm6, %v228_v0 }
 0x1da   :  { %v195_v1 = vpop.permute.xlu1 %194 }
 0x1dc   :  { %v242_v2 = vpop.permute.xlu0 %241 }
 0x1dd   :  { %244 = vst.msk [vmem:[#allocation2 + $0x2] sm:$0x3] %vm197_vm7, %v242_v2 }
 0x1e0   :  { %v256_v9 = vpop.permute.xlu0 %255  ;;  %v180_v3 = vpop.permute.xlu1 %179 }
 0x1e1   :  { %258 = vst.msk [vmem:[#allocation2 + $0x2] sm:$0x3] %vm212_vm8, %v256_v9 }
 0x1e2   :  { %183 = vst.msk [vmem:[#allocation2] sm:$0x3] %vm182_vm6, %v180_v3 }
 0x1e3   :  { %198 = vst.msk [vmem:[#allocation2] sm:$0x3] %vm197_vm7, %v195_v1 }
 0x1e4   :  { %v210_v4 = vpop.permute.xlu1 %209 }
 0x1e5   :  { %213 = vst.msk [vmem:[#allocation2] sm:$0x3] %vm212_vm8, %v210_v4 }
 0x1ec   :  { %v262_v5 = vld [vmem:[#allocation2] sm:$0x3f] }
 0x1ed   :  { %v307_v6 = vcombine.high %v262_v5, %v262_v5  ;;  %v314_v7 = vrot.slane %v262_v5, %v846_v62 }
 0x1ef   :  { %v321_v8 = vrot.slane %v307_v6, %v846_v62  ;;  %v322_v10 = vcombine.high %v314_v7, %v314_v7  ;;  %v533_v62 = vld [vmem:[%s964_s4] ss:$0 sm:$0xff]  ;;  %s680_s4 = scalar_lea.vmem %s518_s21, 32 }
 0x1f0   :  { %p681_p0 = scmp.ne.s32.totalorder %s518_s21, %s680_s4  ;;  %p686_p2 = scmp.lt.s32.totalorder %s680_s4, %s680_s4 }
 0x1f1   :  { %392 = vmatprep.mubr.f32.mxu1 %v322_v10  ;;  %619 = vmatmul.mubr.msk.f32.vlgmr.msra.gmra.mrb[6].mxu0 %vm325_vm9, %v321_v8 }
 0x1f2   :  { %393 = vmatmul.mubr.f32.vlgmr.msra.gmra.mrb[0].mxu1 %v314_v7  ;;  %p687_p3 = por %p686_p2, %p685_p1 }
 0x1f4   :  { %p688_p4 = pnand %p687_p3, %p681_p0 }
 0x2c4   :  { %v464_v11 = vpop.f32.mrb[6].mxu0 }
 0x2c5   :  { %v579_v12 = vpop.f32.mrb[0].mxu1  ;;  %v620_v13 = vpop.f32.mrb[7].mxu0 }
 0x2c6   :  { %v580_v15 = vpop.f32.mrb[1].mxu1 }
 0x2c7   :  { %v581_v16 = vadd.f32 %v580_v15, %v579_v12 }
 0x2c9   :  { %v395_v17 = vadd.f32 %v581_v16, %v531_v14 }
 0x2cb   :  { %v465_v18 = vadd.f32 %v464_v11, %v395_v17 }
 0x2cd   :  { %v468_v20 = vmax.f32 %v465_v18, 0.0 }
 0x2cf   :  { %v484_v22 = vmul.f32 %v534_v19, %v468_v20  ;;  %v474_v23 = vmul.f32 %v533_v62, %v468_v20  ;;  %v493_v26 = vmul.f32 %v535_v21, %v468_v20 }
 0x2d1   :  { %v485_v24 = vsel %vm475_vm10, %v484_v22, 0.0  ;;  %v476_v25 = vsel %vm475_vm10, %v474_v23, 0.0  ;;  %v494_v27 = vsel %vm475_vm10, %v493_v26, 0.0 }
 0x2d2   :  { %486 = vadd.xlane.f32.xlu0 %v485_v24  ;;  %477 = vadd.xlane.f32.xlu1 %v476_v25 }
 0x2d6   :  { %495 = vadd.xlane.f32.xlu0 %v494_v27 }
 0x35f   :  { %v487_v28 = vpop.xlane.xlu0 %486  ;;  %v478_v29 = vpop.xlane.xlu1 %477 }
 0x360   :  { %v498_v31 = vsel %vm497_vm11, %v478_v29, %v487_v28 }
 0x363   :  { %v496_v32 = vpop.xlane.xlu0 %495 }
 0x364   :  { %v500_v33 = vsel %vm499_vm12, %v498_v31, %v496_v32 }
 0x365   :  { %v508_v34 = vadd.f32 %v536_v30, %v500_v33 }
 0x367   :  { %510 = vst.msk [vmem:[#allocation3] sm:$0x3] %vm509_vm13, %v508_v34 }
 0x368   :  { %691 = shalt.err (!%p688_p4)
}
 0x369   :  { %s692_s5 = scalar_lea.hbm %s966_s6, 32 }
 0x36a   :  { %p693_p5 = scmp.ne.s32.totalorder %s966_s6, %s692_s5  ;;  %p696_p6 = scmp.lt.u32.totalorder %s692_s5, %s966_s6 }
 0x36c   :  { %p698_p7 = pnand %p696_p6, %p693_p5 }
 0x36e   :  { %701 = shalt.err (!%p698_p7)
}
 0x36f   :  { %520 = dma.vmem_to_hbm [thread:$0]  %s518_s21, 32, %s966_s6, [#allocation4]  }
 0x370   :  { %702 = dma.done.wait [#allocation4], 32  }
 0x371   :  { %703 = vsyncadd [#allocation4], 4294967264 }
 0x372   :  { %524 = vsyncpa [#allocation4], 1 }

</bundles_post_ra>
